<compile_context>
chip_gen: v5e
topology: v5e:2x2
jax: 0.10.0
libtpu: 0.0.40
codegen_flags: <defaults>
</compile_context>

<pallas_src>
import functools

import jax
import jax.numpy as jnp
from jax.experimental import pallas as pl
from jax.experimental.pallas import tpu as pltpu

LANE_W = 512                    # lane-dense last dim (multiple of 128 -> unmasked vst)
MAX_TILE_ROWS = 2048            # 2048 x 512 x 4B = 4 MiB per buffer
VMEM_LIMIT = 48 * 1024 * 1024   # cap only (~16-17 MiB actually used per pass); < v7x 64 MiB
PALLAS_MIN_ELEMS = 1 << 20      # below this, two pallas_call dispatches cost more than XLA


def _round_up(x, m):
    return ((x + m - 1) // m) * m


# -------- Pass 1: tiled, dual-core partial reduction of msr . q -----------------
def _partial_dot_kernel(msr_ref, q_ref, acc_ref, *, tile_rows, tiles_per_core,
                        valid_rows, needs_mask):
    c = pl.program_id(0)        # core axis ("parallel")
    i = pl.program_id(1)        # tile axis ("arbitrary", reduction)

    @pl.when(i == 0)
    def _init():
        acc_ref[...] = jnp.zeros_like(acc_ref)

    prod = msr_ref[...].astype(jnp.float32) * q_ref[...].astype(jnp.float32)
    if needs_mask:
        # Zero rows past the valid extent (ragged last tile and/or the clamped
        # duplicate tile when the tile count is odd).  VALU work, hidden under DMA.
        row_off = (c * tiles_per_core + i) * tile_rows
        row_ids = jax.lax.broadcasted_iota(jnp.int32, prod.shape, 0) + row_off
        prod = jnp.where(row_ids < valid_rows, prod, 0.0)

    # Fold rows 8-at-a-time with pure vreg adds (aligned with (8,128) native tiles);
    # the single cross-lane reduce happens once, in pass 2.
    folded = prod.reshape(-1, 8, prod.shape[-1]).sum(axis=0)      # (8, LANE_W)
    acc_ref[...] += folded[None]


# -------- Pass 2: broadcast scale (pure stream) ----------------------------------
def _scale_kernel(w1_ref, part_ref, rgb_ref, out_ref):
    w1 = w1_ref[0]
    o2 = jnp.sum(part_ref[...])                                   # tiny XLU reduce
    coef = jnp.exp(-o2) * w1 * (1.0 + w1)                         # exp(o1)/exp(o1+o2)==exp(-o2)
    out_ref[...] = (rgb_ref[...].astype(jnp.float32) * coef).astype(out_ref.dtype)


def _xla_forward(rgb, msr, q, w1):
    """Plain-XLA fallback for small problems (avoids fixed Pallas dispatch cost)."""
    o2 = jnp.dot(msr.reshape(-1).astype(jnp.float32), q.reshape(-1).astype(jnp.float32))
    w1f = jnp.asarray(w1, jnp.float32)
    coef = jnp.exp(-o2) * w1f * (1.0 + w1f)
    return (rgb.astype(jnp.float32) * coef).astype(rgb.dtype)


def attention_fusion(rgb, msr, q, w1, w2, *, use_pallas=None, max_tile_rows=MAX_TILE_ROWS):
    """rgb, msr: NCHW arrays with numel == dim; q: (dim,); w1, w2: scalars.

    w2 is a module parameter but unused in the forward pass (kept for parity).
    """
    del w2  # unused in forward (matches the PyTorch module)
    orig_shape = rgb.shape
    n = rgb.size
    assert msr.size == n and q.size == n, "rgb/msr/q must all have `dim` elements"
    assert max_tile_rows % 8 == 0

    if use_pallas is None:
        use_pallas = n >= PALLAS_MIN_ELEMS
    if not use_pallas:
        return _xla_forward(rgb, msr, q, w1)

    out_dtype = rgb.dtype

    # Pad only to 8*LANE_W (4 KiB) granularity; no copy at all when n is aligned.
    n_pad = _round_up(n, 8 * LANE_W)
    rows = n_pad // LANE_W                         # multiple of 8
    tile_rows = min(max_tile_rows, rows)           # multiple of 8
    num_tiles = pl.cdiv(rows, tile_rows)
    ncores = 2 if num_tiles > 1 else 1             # shard pass-1 reduction over v7x TCs
    tiles_per_core = pl.cdiv(num_tiles, ncores)
    needs_mask = (ncores * tiles_per_core * tile_rows != rows)

    def pack(x):
        flat = x.reshape(-1)                       # free bitcast, native dtype kept
        if n_pad != n:
            # TODO(synk): handle the sub-4KiB ragged tail fully in-kernel (1-D / pl.ANY
            # path) to remove this last wrapper-side copy when n isn't 4 KiB-aligned.
            flat = jnp.pad(flat, (0, n_pad - n))
        return flat.reshape(rows, LANE_W)

    rgb2, msr2, q2 = pack(rgb), pack(msr), pack(q)
    w1_arr = jnp.asarray(w1, jnp.float32).reshape(1)

    def in_map(c, i):
        # Clamp so an odd tile count never yields a fully out-of-bounds block; the
        # duplicate read is zeroed by the in-kernel row mask.
        return (jnp.minimum(c * tiles_per_core + i, num_tiles - 1), 0)

    partial_kernel = functools.partial(
        _partial_dot_kernel, tile_rows=tile_rows, tiles_per_core=tiles_per_core,
        valid_rows=rows, needs_mask=needs_mask)

    # ---- Pass 1: per-core per-lane partial sums of msr * q ----
    partials = pl.pallas_call(
        partial_kernel,
        out_shape=jax.ShapeDtypeStruct((ncores, 8, LANE_W), jnp.float32),
        grid=(ncores, tiles_per_core),
        in_specs=[
            pl.BlockSpec((tile_rows, LANE_W), in_map),             # msr
            pl.BlockSpec((tile_rows, LANE_W), in_map),             # q
        ],
        out_specs=pl.BlockSpec((1, 8, LANE_W), lambda c, i: (c, 0, 0)),  # resident acc / core
        compiler_params=pltpu.CompilerParams(
            dimension_semantics=("parallel", "arbitrary"),
            vmem_limit_bytes=VMEM_LIMIT,
        ),
        cost_estimate=pl.CostEstimate(
            flops=2 * n_pad,
            transcendentals=0,
            bytes_accessed=n_pad * (msr2.dtype.itemsize + q2.dtype.itemsize)
                           + ncores * 8 * LANE_W * 4),
    )(msr2, q2)

    # ---- Pass 2: out = rgb * coef (tiled stream, megacore-parallel) ----
    out2d = pl.pallas_call(
        _scale_kernel,
        out_shape=jax.ShapeDtypeStruct((rows, LANE_W), out_dtype),
        grid=(num_tiles,),
        in_specs=[
            pl.BlockSpec(memory_space=pltpu.SMEM),                         # W1 scalar
            pl.BlockSpec((ncores, 8, LANE_W), lambda i: (0, 0, 0)),        # partials (fetched once)
            pl.BlockSpec((tile_rows, LANE_W), lambda i: (i, 0)),           # rgb
        ],
        out_specs=pl.BlockSpec((tile_rows, LANE_W), lambda i: (i, 0)),
        compiler_params=pltpu.CompilerParams(
            dimension_semantics=("parallel",),
            vmem_limit_bytes=VMEM_LIMIT,
        ),
        cost_estimate=pl.CostEstimate(
            flops=2 * n_pad,
            transcendentals=int(num_tiles),
            bytes_accessed=n_pad * (rgb2.dtype.itemsize + jnp.dtype(out_dtype).itemsize)
                           + ncores * 8 * LANE_W * 4),
    )(w1_arr, partials, rgb2)

    if n_pad == n:
        return out2d.reshape(orig_shape)           # free bitcast, no extra HBM pass
    return out2d.reshape(-1)[:n].reshape(orig_shape)


def ref_forward(rgb, msr, q, w1):
    """Plain-JAX replica of the PyTorch forward (for a correctness check)."""
    o1 = jnp.dot(rgb.reshape(-1), q)
    o2 = jnp.dot(msr.reshape(-1), q)
    s1 = jnp.exp(o1) / jnp.exp(o1 + o2)
    # NOTE: the module recomputes output2 here and immediately overwrites it (dead code).
    out1 = s1 * w1
    final1 = out1 * rgb
    out2 = out1 * w1
    final2 = out2 * rgb
    return final1 + final2


if __name__ == "__main__":
    key = jax.random.PRNGKey(0)

    # (shape, extra kwargs) — second config forces multiple tiles + the dual-core
    # split + ragged-tile masking with still-small data.
    configs = [
        ((2, 4, 16, 16), dict()),                         # n=2048: single tile, pad path
        ((2, 5, 32, 64), dict(max_tile_rows=16)),         # n=20480: 3 tiles, 2 cores, masked tail
    ]

    last = None
    for shape, kwargs in configs:
        key, k_rgb, k_msr, k_q, k_w1, k_w2 = jax.random.split(key, 6)
        dim = 1
        for s in shape:
            dim *= s

        # Small scale keeps the reference's exp(o1)/exp(o1+o2) safely in f32 range.
        rgb = 0.01 * jax.random.normal(k_rgb, shape, dtype=jnp.float32)
        msr = 0.01 * jax.random.normal(k_msr, shape, dtype=jnp.float32)

        # Deterministic parameter init mirroring the module's uniform_(0, 1) inits.
        q = jax.random.uniform(k_q, (dim,), dtype=jnp.float32)
        w1 = jax.random.uniform(k_w1, (), dtype=jnp.float32)
        w2 = jax.random.uniform(k_w2, (), dtype=jnp.float32)   # unused in forward

        out = attention_fusion(rgb, msr, q, w1, w2, use_pallas=True, **kwargs)
        out = jax.block_until_ready(out)

        ref = ref_forward(rgb, msr, q, w1)
        assert out.shape == rgb.shape
        assert jnp.allclose(out, ref, rtol=1e-5, atol=1e-6), f"mismatch vs reference for {shape}"
        last = (rgb, msr, q, w1, w2, ref)

    # Auto-dispatch path (small n -> plain-XLA fallback).
    rgb, msr, q, w1, w2, ref = last
    out_auto = jax.block_until_ready(attention_fusion(rgb, msr, q, w1, w2))
    assert jnp.allclose(out_auto, ref, rtol=1e-5, atol=1e-6), "fallback mismatch vs reference"

    print("KERNEL_OK")
</pallas_src>

<mosaic_0001>
module attributes {stable_mosaic.version = 11 : i64} {
  func.func @_partial_dot_kernel(%arg0: i32, %arg1: i32, %arg2: memref<8x512xf32, #tpu.memory_space<vmem>>, %arg3: memref<8x512xf32, #tpu.memory_space<vmem>>, %arg4: memref<1x8x512xf32, #tpu.memory_space<vmem>>) attributes {dimension_semantics = [#tpu.dimension_semantics<parallel>, #tpu.dimension_semantics<arbitrary>], iteration_bounds = array<i64: 1, 1>, scalar_prefetch = 0 : i64, scratch_operands = 0 : i64, tpu.core_type = #tpu.core_type<tc>, window_params = [{transform_indices = @transform_0, window_bounds = array<i64: 8, 512>}, {transform_indices = @transform_1, window_bounds = array<i64: 8, 512>}, {transform_indices = @transform_2, window_bounds = array<i64: 1, 8, 512>}]} {
    %c0_i32 = arith.constant 0 : i32
    %0 = arith.cmpi eq, %arg1, %c0_i32 : i32
    %1 = arith.extui %0 : i1 to i32
    %c0_i32_0 = arith.constant 0 : i32
    %2 = arith.cmpi ne, %1, %c0_i32_0 : i32
    scf.if %2 {
      %cst_10 = arith.constant 0.000000e+00 : f32
      %12 = vector.broadcast %cst_10 : f32 to vector<1x8x512xf32>
      %c0_11 = arith.constant 0 : index
      %c0_12 = arith.constant 0 : index
      %c0_13 = arith.constant 0 : index
      %13 = vector.load %arg4[%c0_11, %c0_12, %c0_13] : memref<1x8x512xf32, #tpu.memory_space<vmem>>, vector<1x8x512xf32>
      tpu.vector_store %arg4[%c0_11, %c0_12, %c0_13], %12 {strides = array<i32>} : memref<1x8x512xf32, #tpu.memory_space<vmem>>, vector<1x8x512xf32>,
    } else {
    }
    %c0 = arith.constant 0 : index
    %c0_1 = arith.constant 0 : index
    %3 = vector.load %arg2[%c0, %c0_1] : memref<8x512xf32, #tpu.memory_space<vmem>>, vector<8x512xf32>
    %c0_2 = arith.constant 0 : index
    %c0_3 = arith.constant 0 : index
    %4 = vector.load %arg3[%c0_2, %c0_3] : memref<8x512xf32, #tpu.memory_space<vmem>>, vector<8x512xf32>
    %5 = arith.mulf %3, %4 : vector<8x512xf32>
    %6 = vector.shape_cast %5 : vector<8x512xf32> to vector<1x8x512xf32>
    %cst = arith.constant dense<0.000000e+00> : vector<8x512xf32>
    %7 = vector.multi_reduction <add>, %6, %cst [0] : vector<1x8x512xf32> to vector<8x512xf32>
    %c0_4 = arith.constant 0 : index
    %c0_5 = arith.constant 0 : index
    %c0_6 = arith.constant 0 : index
    %8 = vector.load %arg4[%c0_4, %c0_5, %c0_6] : memref<1x8x512xf32, #tpu.memory_space<vmem>>, vector<1x8x512xf32>
    %9 = vector.shape_cast %7 : vector<8x512xf32> to vector<1x8x512xf32>
    %10 = arith.addf %8, %9 : vector<1x8x512xf32>
    %c0_7 = arith.constant 0 : index
    %c0_8 = arith.constant 0 : index
    %c0_9 = arith.constant 0 : index
    %11 = vector.load %arg4[%c0_7, %c0_8, %c0_9] : memref<1x8x512xf32, #tpu.memory_space<vmem>>, vector<1x8x512xf32>
    tpu.vector_store %arg4[%c0_7, %c0_8, %c0_9], %10 {strides = array<i32>} : memref<1x8x512xf32, #tpu.memory_space<vmem>>, vector<1x8x512xf32>,
    return
  }
  func.func @transform_0(%arg0: i32, %arg1: i32) -> (i32, i32) {
    %c1_i32 = arith.constant 1 : i32
    %0 = arith.muli %arg0, %c1_i32 : i32
    %1 = arith.addi %0, %arg1 : i32
    %c0_i32 = arith.constant 0 : i32
    %2 = arith.minsi %1, %c0_i32 : i32
    %c0_i32_0 = arith.constant 0 : i32
    %c0_i32_1 = arith.constant 0 : i32
    return %2, %c0_i32_0 : i32, i32
  }
  func.func @transform_1(%arg0: i32, %arg1: i32) -> (i32, i32) {
    %c1_i32 = arith.constant 1 : i32
    %0 = arith.muli %arg0, %c1_i32 : i32
    %1 = arith.addi %0, %arg1 : i32
    %c0_i32 = arith.constant 0 : i32
    %2 = arith.minsi %1, %c0_i32 : i32
    %c0_i32_0 = arith.constant 0 : i32
    %c0_i32_1 = arith.constant 0 : i32
    return %2, %c0_i32_0 : i32, i32
  }
  func.func @transform_2(%arg0: i32, %arg1: i32) -> (i32, i32, i32) {
    %c0_i32 = arith.constant 0 : i32
    %c0_i32_0 = arith.constant 0 : i32
    %c0_i32_1 = arith.constant 0 : i32
    return %arg0, %c0_i32, %c0_i32_0 : i32, i32, i32
  }
}

</mosaic_0001>

<bundles_post_ra>
// kernel: tpu_custom_call.1
= control target key start
LH: loop header
LB: loop body
LE: loop exit
PB: predicated region body
PF: predicated region fallthrough
CT: control target
= control target key end

     0   :  { %7 = vsyncpa [#allocation3], 0  ;;  %s225_s0 = inlined_call_operand.hbm [shape: f32[8,512], index: 0, kind: input, shape index: {}]   ;;  %s226_s1 = inlined_call_operand.hbm [shape: f32[8,512], index: 1, kind: input, shape index: {}]   ;;  %s227_s2 = inlined_call_operand.hbm [shape: f32[1,8,512], index: 2, kind: output, shape index: {}]  }
   0x1   :  { %8 = vsyncpa [#allocation6], 0 }
   0x2   :  { %9 = vsyncpa [#allocation4], 0  ;;  %s21_s11 = sshll.u32 %s225_s0, 4  ;;  %s198_s12 = smov [#allocation2]   ;;  %s22_s11 = int_to_ptr.hbm [resolvable:$true] %s21_s11 }
   0x3   :  { %s23_s13 = sshll.u32 %s198_s12, 4  ;;  %s38_s16 = sshll.u32 %s226_s1, 4  ;;  %s24_s13 = int_to_ptr.vmem [resolvable:$true] %s23_s13  ;;  %s39_s16 = int_to_ptr.hbm [resolvable:$true] %s38_s16 }
   0x4   :  { %26 = dma.hbm_to_vmem [thread:$0]  %s22_s11, 512, %s24_s13, [#allocation3]  }
   0x5   :  { %s199_s17 = smov [#allocation5]  }
   0x6   :  { %s40_s18 = sshll.u32 %s199_s17, 4  ;;  %s41_s18 = int_to_ptr.vmem [resolvable:$true] %s40_s18 }
   0x7   :  { %43 = dma.hbm_to_vmem [thread:$0]  %s39_s16, 512, %s41_s18, [#allocation6]  }
   0x8   :  { %192 = dma.done.wait [#allocation3], 512  }
   0x9   :  { %193 = vsyncadd [#allocation3], 4294966784 }
   0xa   :  { %194 = dma.done.wait [#allocation6], 512  }
   0xb   :  { %195 = vsyncadd [#allocation6], 4294966784  ;;  %v66_v0 = vld [vmem:[#allocation2] sm:$0xff]  ;;  %v67_v2 = vld [vmem:[#allocation2 + $0x8] sm:$0xff]  ;;  %s200_s0 = smov [#allocation7]   ;;  %s101_s21 = sshll.u32 %s227_s2, 4  ;;  %s102_s21 = int_to_ptr.hbm [resolvable:$true] %s101_s21 }
   0xc   :  { %v70_v1 = vld [vmem:[#allocation5] sm:$0xff]  ;;  %v71_v4 = vld [vmem:[#allocation5 + $0x8] sm:$0xff]  ;;  %v68_v5 = vld [vmem:[#allocation2 + $0x10] sm:$0xff]  ;;  %s99_s1 = sshll.u32 %s200_s0, 4  ;;  %s100_s1 = int_to_ptr.vmem [resolvable:$true] %s99_s1 }
   0xd   :  { %v74_v3 = vmul.f32 %v70_v1, %v66_v0  ;;  %v72_v6 = vld [vmem:[#allocation5 + $0x10] sm:$0xff]  ;;  %v75_v7 = vmul.f32 %v71_v4, %v67_v2  ;;  %v69_v9 = vld [vmem:[#allocation2 + $0x18] sm:$0xff] }
   0xe   :  { %v76_v8 = vmul.f32 %v72_v6, %v68_v5  ;;  %v73_v10 = vld [vmem:[#allocation5 + $0x18] sm:$0xff] }
   0xf   :  { %v77_v11 = vmul.f32 %v73_v10, %v69_v9  ;;  %90 = vst [vmem:[#allocation7] sm:$0xff] %v74_v3 }
  0x10   :  { %91 = vst [vmem:[#allocation7 + $0x8] sm:$0xff] %v75_v7 }
  0x11   :  { %92 = vst [vmem:[#allocation7 + $0x10] sm:$0xff] %v76_v8 }
  0x12   :  { %93 = vst [vmem:[#allocation7 + $0x18] sm:$0xff] %v77_v11 }
  0x13   :  { %104 = dma.vmem_to_hbm [thread:$0]  %s100_s1, 512, %s102_s21, [#allocation4]  }
  0x14   :  { %196 = dma.done.wait [#allocation4], 512  }
  0x15   :  { %197 = vsyncadd [#allocation4], 4294966784 }
  0x16   :  { %109 = vsyncpa [#allocation3], 1 }
  0x17   :  { %110 = vsyncpa [#allocation6], 1 }
  0x18   :  { %111 = vsyncpa [#allocation4], 1 }

</bundles_post_ra>
